<compile_context>
chip_gen: v6e
topology: v6e:2x2x1
jax: 0.10.0
libtpu: 0.0.40
codegen_flags: <defaults>
</compile_context>

<pallas_src>
import jax
import jax.numpy as jnp
from jax.experimental import pallas as pl
from jax.experimental.pallas import tpu as pltpu


def _round_up(x, m):
    return ((x + m - 1) // m) * m


def _nbytes(a):
    return int(a.size) * a.dtype.itemsize


def _critic_kernel(sa_ref, w1_ref, b1_ref,
                   w2a_ref, w2b_ref, b2_ref,
                   w3a_ref, w3b_ref, b3_ref,
                   q_ref):
    """One batch tile of the twin-Q MLP in feature-major (features, batch) form."""
    H = w2a_ref.shape[0]
    cdt = w2a_ref.dtype          # MXU input dtype (f32 or bf16); accumulate f32

    # In-kernel cast (VPU filler) instead of a wrapper-side XLA convert.
    sa = sa_ref[...].astype(cdt)                                   # (K, TB)

    # Layer 1, both heads fused, single matmul over the full K = S + A:
    #   h1 = [W1_q1 | W1_q2]^T @ sa + b1                           -> (2H, TB)
    h1 = (jnp.dot(w1_ref[...], sa, preferred_element_type=jnp.float32)
          + b1_ref[...])
    h1 = jnp.maximum(h1, 0.0)

    # Layer 2, per head.  H must be a multiple of 8 (ideally 128) so these
    # sublane slices stay free views rather than relayout copies.
    b2 = b2_ref[...]
    h2a = jnp.maximum(
        jnp.dot(w2a_ref[...], h1[:H, :].astype(cdt),
                preferred_element_type=jnp.float32) + b2[:H, :], 0.0)
    h2b = jnp.maximum(
        jnp.dot(w2b_ref[...], h1[H:, :].astype(cdt),
                preferred_element_type=jnp.float32) + b2[H:, :], 0.0)

    # Layer 3 (N=1): VPU multiply + feature(sublane)-axis reduce -- no
    # nearly-empty MXU pass, and the (1, TB) result is already lane-dense.
    q1 = jnp.sum(h2a * w3a_ref[...], axis=0, keepdims=True)       # (1, TB)
    q2 = jnp.sum(h2b * w3b_ref[...], axis=0, keepdims=True)       # (1, TB)

    q_ref[...] = (jnp.concatenate([q1, q2], axis=0)
                  + b3_ref[...]).astype(q_ref.dtype)               # (2, TB)


def init_critic_params(key, state_dim, action_dim, hidden_dim=256):
    """Deterministic parameter init (uniform fan-in, like torch default).

    Weights stored as (in_features, out_features); biases as (1, out).
    """
    dims = (state_dim + action_dim, hidden_dim, hidden_dim, 1)
    params = {}
    for head in ("q1", "q2"):
        layers = []
        for i in range(len(dims) - 1):
            key, kw, kb = jax.random.split(key, 3)
            bound = 1.0 / jnp.sqrt(dims[i])
            w = jax.random.uniform(kw, (dims[i], dims[i + 1]),
                                   jnp.float32, -bound, bound)
            b = jax.random.uniform(kb, (1, dims[i + 1]),
                                   jnp.float32, -bound, bound)
            layers.append((w, b))
        params[head] = layers
    return params


def pack_critic_params(params, dtype=jnp.bfloat16):
    """One-time packing into the kernel's fused, feature-major layout.

    bf16 MXU inputs by default (MXU-native on v5e/v6e/v7x, halves resident
    weight VMEM); biases and the final-layer weights stay f32 because the
    whole epilogue (bias/ReLU/reduce) runs in f32.
    """
    (w1a, b1a), (w2a, b2a), (w3a, b3a) = params["q1"]
    (w1b, b1b), (w2b, b2b), (w3b, b3b) = params["q2"]
    return dict(
        w1=jnp.concatenate([w1a, w1b], axis=1).T.astype(dtype),   # (2H, K)
        b1=jnp.concatenate([b1a, b1b], axis=1).T,                 # (2H, 1) f32
        w2a=w2a.T.astype(dtype),                                  # (H, H)
        w2b=w2b.T.astype(dtype),                                  # (H, H)
        b2=jnp.concatenate([b2a, b2b], axis=1).T,                 # (2H, 1) f32
        w3a=w3a.astype(jnp.float32),                              # (H, 1)
        w3b=w3b.astype(jnp.float32),                              # (H, 1)
        b3=jnp.concatenate([b3a, b3b], axis=1).T,                 # (2, 1)  f32
    )


def critic_forward(state, action, packed, *, block_batch=2048):
    """Twin-Q forward.  Returns (q1, q2), each (B,) -- the Squeeze(-1) outputs."""
    B = state.shape[0]
    H = packed["w2a"].shape[0]

    # Single layer-1 matmul over K = S + A: concat wrapper-side (tiny HBM
    # cost) and feed the kernel feature-major (K, B).  Dtype cast happens
    # inside the kernel.
    sa_t = jnp.concatenate([state, action], axis=1).astype(jnp.float32).T
    K = sa_t.shape[0]

    # Tile selection:
    #  * multiple of 128 so batch is the lane axis of every block (dense
    #    loads/stores), unless one tile covers B (block dims == array dims);
    #  * at most ~block_batch rows (~4H f32 of intermediates per row -> TB=2048
    #    at H=256 is ~8 MiB, well inside v7x's 64 MiB/TC);
    #  * >=2 grid steps when B allows, so v7x's second TensorCore gets work.
    half = _round_up(pl.cdiv(B, 2), 128)
    TB = min(_round_up(block_batch, 128), half)
    if TB >= B:
        TB = B
    grid = (pl.cdiv(B, TB),)

    batch_map = lambda i: (0, i)    # stream batch tiles along the lane axis
    const_map = lambda i: (0, 0)    # weights stay VMEM-resident (no re-DMA)

    in_specs = [
        pl.BlockSpec((K, TB), batch_map),
        pl.BlockSpec((2 * H, K), const_map),
        pl.BlockSpec((2 * H, 1), const_map),
        pl.BlockSpec((H, H), const_map),
        pl.BlockSpec((H, H), const_map),
        pl.BlockSpec((2 * H, 1), const_map),
        pl.BlockSpec((H, 1), const_map),
        pl.BlockSpec((H, 1), const_map),
        pl.BlockSpec((2, 1), const_map),
    ]
    out_specs = pl.BlockSpec((2, TB), batch_map)

    args = (sa_t, packed["w1"], packed["b1"],
            packed["w2a"], packed["w2b"], packed["b2"],
            packed["w3a"], packed["w3b"], packed["b3"])

    flops = 2 * B * (K * 2 * H + 2 * H * H) + 4 * B * H
    bytes_accessed = (_nbytes(sa_t) + 2 * B * 4
                      + sum(_nbytes(v) for v in packed.values()))
    cost = pl.CostEstimate(flops=flops, transcendentals=0,
                           bytes_accessed=bytes_accessed)

    q = pl.pallas_call(
        _critic_kernel,
        out_shape=jax.ShapeDtypeStruct((2, B), jnp.float32),
        grid=grid,
        in_specs=in_specs,
        out_specs=out_specs,
        compiler_params=pltpu.CompilerParams(
            dimension_semantics=("parallel",),
            # v7x has 64 MiB VMEM per TensorCore; 48 MiB leaves compiler headroom.
            vmem_limit_bytes=48 * 1024 * 1024),
        cost_estimate=cost,
    )(*args)

    # Squeeze(dim=-1): each head's (B, 1) result is already a contiguous (B,) row.
    return q[0], q[1]


def _reference_forward(state, action, params):
    sa = jnp.concatenate([state, action], axis=1).astype(jnp.float32)

    def mlp(layers, x):
        (w1, b1), (w2, b2), (w3, b3) = layers
        h = jnp.maximum(x @ w1 + b1, 0.0)
        h = jnp.maximum(h @ w2 + b2, 0.0)
        return (h @ w3 + b3)[:, 0]

    return mlp(params["q1"], sa), mlp(params["q2"], sa)


if __name__ == "__main__":
    key = jax.random.PRNGKey(0)
    k_state, k_action, k_params, k_state2, k_action2 = jax.random.split(key, 5)

    batch, state_dim, action_dim, hidden_dim = 2, 8, 4, 32

    state = jax.random.normal(k_state, (batch, state_dim), jnp.float32)
    action = jax.random.normal(k_action, (batch, action_dim), jnp.float32)
    params = init_critic_params(k_params, state_dim, action_dim, hidden_dim)
    q1_ref, q2_ref = _reference_forward(state, action, params)

    # f32 weight path -- exact check against the pure-JAX reference.
    packed_f32 = pack_critic_params(params, dtype=jnp.float32)
    q1, q2 = critic_forward(state, action, packed_f32)
    jax.block_until_ready((q1, q2))
    assert q1.shape == (batch,) and q2.shape == (batch,)
    assert jnp.allclose(q1, q1_ref, atol=1e-5, rtol=1e-5)
    assert jnp.allclose(q2, q2_ref, atol=1e-5, rtol=1e-5)

    # Multi-tile grid (non-divisible batch) -- exercises pipelining and the
    # masked writeback of the partial lane tile.
    big_b = 300
    state_b = jax.random.normal(k_state2, (big_b, state_dim), jnp.float32)
    action_b = jax.random.normal(k_action2, (big_b, action_dim), jnp.float32)
    q1b, q2b = critic_forward(state_b, action_b, packed_f32, block_batch=128)
    jax.block_until_ready((q1b, q2b))
    q1b_ref, q2b_ref = _reference_forward(state_b, action_b, params)
    assert q1b.shape == (big_b,) and q2b.shape == (big_b,)
    assert jnp.allclose(q1b, q1b_ref, atol=1e-5, rtol=1e-5)
    assert jnp.allclose(q2b, q2b_ref, atol=1e-5, rtol=1e-5)

    # Default bf16 MXU-input path (f32 accumulate) -- looser tolerance.
    packed_bf16 = pack_critic_params(params)
    q1h, q2h = critic_forward(state, action, packed_bf16)
    jax.block_until_ready((q1h, q2h))
    assert jnp.allclose(q1h, q1_ref, atol=5e-2, rtol=5e-2)
    assert jnp.allclose(q2h, q2_ref, atol=5e-2, rtol=5e-2)

    print("KERNEL_OK")
</pallas_src>

<mosaic_0001>
module attributes {stable_mosaic.version = 11 : i64} {
  func.func @_critic_kernel(%arg0: i32, %arg1: memref<12x2xf32, #tpu.memory_space<vmem>>, %arg2: memref<64x12xf32, #tpu.memory_space<vmem>>, %arg3: memref<64x1xf32, #tpu.memory_space<vmem>>, %arg4: memref<32x32xf32, #tpu.memory_space<vmem>>, %arg5: memref<32x32xf32, #tpu.memory_space<vmem>>, %arg6: memref<64x1xf32, #tpu.memory_space<vmem>>, %arg7: memref<32x1xf32, #tpu.memory_space<vmem>>, %arg8: memref<32x1xf32, #tpu.memory_space<vmem>>, %arg9: memref<2x1xf32, #tpu.memory_space<vmem>>, %arg10: memref<2x2xf32, #tpu.memory_space<vmem>>) attributes {dimension_semantics = [#tpu.dimension_semantics<parallel>], iteration_bounds = array<i64: 1>, scalar_prefetch = 0 : i64, scratch_operands = 0 : i64, tpu.core_type = #tpu.core_type<tc>, window_params = [{transform_indices = @transform_0, window_bounds = array<i64: 12, 2>}, {pipeline_mode = #tpu.pipeline_mode<synchronous>, transform_indices = @transform_1, window_bounds = array<i64: 64, 12>}, {pipeline_mode = #tpu.pipeline_mode<synchronous>, transform_indices = @transform_2, window_bounds = array<i64: 64, 1>}, {pipeline_mode = #tpu.pipeline_mode<synchronous>, transform_indices = @transform_3, window_bounds = array<i64: 32, 32>}, {pipeline_mode = #tpu.pipeline_mode<synchronous>, transform_indices = @transform_4, window_bounds = array<i64: 32, 32>}, {pipeline_mode = #tpu.pipeline_mode<synchronous>, transform_indices = @transform_5, window_bounds = array<i64: 64, 1>}, {pipeline_mode = #tpu.pipeline_mode<synchronous>, transform_indices = @transform_6, window_bounds = array<i64: 32, 1>}, {pipeline_mode = #tpu.pipeline_mode<synchronous>, transform_indices = @transform_7, window_bounds = array<i64: 32, 1>}, {pipeline_mode = #tpu.pipeline_mode<synchronous>, transform_indices = @transform_8, window_bounds = array<i64: 2, 1>}, {transform_indices = @transform_9, window_bounds = array<i64: 2, 2>}]} {
    %c0 = arith.constant 0 : index
    %c0_0 = arith.constant 0 : index
    %0 = vector.load %arg1[%c0, %c0_0] : memref<12x2xf32, #tpu.memory_space<vmem>>, vector<12x2xf32>
    %c0_1 = arith.constant 0 : index
    %c0_2 = arith.constant 0 : index
    %1 = vector.load %arg2[%c0_1, %c0_2] : memref<64x12xf32, #tpu.memory_space<vmem>>, vector<64x12xf32>
    %cst = arith.constant dense<0.000000e+00> : vector<64x2xf32>
    %2 = tpu.matmul %1, %0, %cst {dimension_numbers = #tpu.dot_dimension_numbers<[1], [0], [0], [1], [0, 0, 1, 1], [], []>} : vector<64x12xf32>, vector<12x2xf32>, vector<64x2xf32> -> vector<64x2xf32>
    %c0_3 = arith.constant 0 : index
    %c0_4 = arith.constant 0 : index
    %3 = vector.load %arg3[%c0_3, %c0_4] : memref<64x1xf32, #tpu.memory_space<vmem>>, vector<64x1xf32>
    %4 = vector.broadcast %3 : vector<64x1xf32> to vector<64x2xf32>
    %5 = arith.addf %2, %4 : vector<64x2xf32>
    %cst_5 = arith.constant 0.000000e+00 : f32
    %6 = vector.broadcast %cst_5 : f32 to vector<64x2xf32>
    %7 = arith.maximumf %5, %6 : vector<64x2xf32>
    %c0_6 = arith.constant 0 : index
    %c0_7 = arith.constant 0 : index
    %8 = vector.load %arg6[%c0_6, %c0_7] : memref<64x1xf32, #tpu.memory_space<vmem>>, vector<64x1xf32>
    %c0_8 = arith.constant 0 : index
    %c0_9 = arith.constant 0 : index
    %9 = vector.load %arg4[%c0_8, %c0_9] : memref<32x32xf32, #tpu.memory_space<vmem>>, vector<32x32xf32>
    %10 = vector.extract_strided_slice %7 {offsets = [0, 0], sizes = [32, 2], strides = [1, 1]} : vector<64x2xf32> to vector<32x2xf32>
    %cst_10 = arith.constant dense<0.000000e+00> : vector<32x2xf32>
    %11 = tpu.matmul %9, %10, %cst_10 {dimension_numbers = #tpu.dot_dimension_numbers<[1], [0], [0], [1], [0, 0, 1, 1], [], []>} : vector<32x32xf32>, vector<32x2xf32>, vector<32x2xf32> -> vector<32x2xf32>
    %12 = vector.extract_strided_slice %8 {offsets = [0, 0], sizes = [32, 1], strides = [1, 1]} : vector<64x1xf32> to vector<32x1xf32>
    %13 = vector.broadcast %12 : vector<32x1xf32> to vector<32x2xf32>
    %14 = arith.addf %11, %13 : vector<32x2xf32>
    %cst_11 = arith.constant 0.000000e+00 : f32
    %15 = vector.broadcast %cst_11 : f32 to vector<32x2xf32>
    %16 = arith.maximumf %14, %15 : vector<32x2xf32>
    %c0_12 = arith.constant 0 : index
    %c0_13 = arith.constant 0 : index
    %17 = vector.load %arg5[%c0_12, %c0_13] : memref<32x32xf32, #tpu.memory_space<vmem>>, vector<32x32xf32>
    %18 = vector.extract_strided_slice %7 {offsets = [32, 0], sizes = [32, 2], strides = [1, 1]} : vector<64x2xf32> to vector<32x2xf32>
    %cst_14 = arith.constant dense<0.000000e+00> : vector<32x2xf32>
    %19 = tpu.matmul %17, %18, %cst_14 {dimension_numbers = #tpu.dot_dimension_numbers<[1], [0], [0], [1], [0, 0, 1, 1], [], []>} : vector<32x32xf32>, vector<32x2xf32>, vector<32x2xf32> -> vector<32x2xf32>
    %20 = vector.extract_strided_slice %8 {offsets = [32, 0], sizes = [32, 1], strides = [1, 1]} : vector<64x1xf32> to vector<32x1xf32>
    %21 = vector.broadcast %20 : vector<32x1xf32> to vector<32x2xf32>
    %22 = arith.addf %19, %21 : vector<32x2xf32>
    %cst_15 = arith.constant 0.000000e+00 : f32
    %23 = vector.broadcast %cst_15 : f32 to vector<32x2xf32>
    %24 = arith.maximumf %22, %23 : vector<32x2xf32>
    %c0_16 = arith.constant 0 : index
    %c0_17 = arith.constant 0 : index
    %25 = vector.load %arg7[%c0_16, %c0_17] : memref<32x1xf32, #tpu.memory_space<vmem>>, vector<32x1xf32>
    %26 = vector.broadcast %25 : vector<32x1xf32> to vector<32x2xf32>
    %27 = arith.mulf %16, %26 : vector<32x2xf32>
    %cst_18 = arith.constant dense<0.000000e+00> : vector<2xf32>
    %28 = vector.multi_reduction <add>, %27, %cst_18 [0] : vector<32x2xf32> to vector<2xf32>
    %29 = vector.shape_cast %28 : vector<2xf32> to vector<1x2xf32>
    %c0_19 = arith.constant 0 : index
    %c0_20 = arith.constant 0 : index
    %30 = vector.load %arg8[%c0_19, %c0_20] : memref<32x1xf32, #tpu.memory_space<vmem>>, vector<32x1xf32>
    %31 = vector.broadcast %30 : vector<32x1xf32> to vector<32x2xf32>
    %32 = arith.mulf %24, %31 : vector<32x2xf32>
    %cst_21 = arith.constant dense<0.000000e+00> : vector<2xf32>
    %33 = vector.multi_reduction <add>, %32, %cst_21 [0] : vector<32x2xf32> to vector<2xf32>
    %34 = vector.shape_cast %33 : vector<2xf32> to vector<1x2xf32>
    %35 = tpu.concatenate %29, %34 in 0 : vector<1x2xf32>, vector<1x2xf32> -> vector<2x2xf32>
    %c0_22 = arith.constant 0 : index
    %c0_23 = arith.constant 0 : index
    %36 = vector.load %arg9[%c0_22, %c0_23] : memref<2x1xf32, #tpu.memory_space<vmem>>, vector<2x1xf32>
    %37 = vector.broadcast %36 : vector<2x1xf32> to vector<2x2xf32>
    %38 = arith.addf %35, %37 : vector<2x2xf32>
    %c0_24 = arith.constant 0 : index
    %c0_25 = arith.constant 0 : index
    %39 = vector.load %arg10[%c0_24, %c0_25] : memref<2x2xf32, #tpu.memory_space<vmem>>, vector<2x2xf32>
    tpu.vector_store %arg10[%c0_24, %c0_25], %38 {strides = array<i32>} : memref<2x2xf32, #tpu.memory_space<vmem>>, vector<2x2xf32>,
    return
  }
  func.func @transform_0(%arg0: i32) -> (i32, i32) {
    %c0_i32 = arith.constant 0 : i32
    %c0_i32_0 = arith.constant 0 : i32
    return %c0_i32, %arg0 : i32, i32
  }
  func.func @transform_1(%arg0: i32) -> (i32, i32) {
    %c0_i32 = arith.constant 0 : i32
    %c0_i32_0 = arith.constant 0 : i32
    %c0_i32_1 = arith.constant 0 : i32
    return %c0_i32, %c0_i32_0 : i32, i32
  }
  func.func @transform_2(%arg0: i32) -> (i32, i32) {
    %c0_i32 = arith.constant 0 : i32
    %c0_i32_0 = arith.constant 0 : i32
    %c0_i32_1 = arith.constant 0 : i32
    return %c0_i32, %c0_i32_0 : i32, i32
  }
  func.func @transform_3(%arg0: i32) -> (i32, i32) {
    %c0_i32 = arith.constant 0 : i32
    %c0_i32_0 = arith.constant 0 : i32
    %c0_i32_1 = arith.constant 0 : i32
    return %c0_i32, %c0_i32_0 : i32, i32
  }
  func.func @transform_4(%arg0: i32) -> (i32, i32) {
    %c0_i32 = arith.constant 0 : i32
    %c0_i32_0 = arith.constant 0 : i32
    %c0_i32_1 = arith.constant 0 : i32
    return %c0_i32, %c0_i32_0 : i32, i32
  }
  func.func @transform_5(%arg0: i32) -> (i32, i32) {
    %c0_i32 = arith.constant 0 : i32
    %c0_i32_0 = arith.constant 0 : i32
    %c0_i32_1 = arith.constant 0 : i32
    return %c0_i32, %c0_i32_0 : i32, i32
  }
  func.func @transform_6(%arg0: i32) -> (i32, i32) {
    %c0_i32 = arith.constant 0 : i32
    %c0_i32_0 = arith.constant 0 : i32
    %c0_i32_1 = arith.constant 0 : i32
    return %c0_i32, %c0_i32_0 : i32, i32
  }
  func.func @transform_7(%arg0: i32) -> (i32, i32) {
    %c0_i32 = arith.constant 0 : i32
    %c0_i32_0 = arith.constant 0 : i32
    %c0_i32_1 = arith.constant 0 : i32
    return %c0_i32, %c0_i32_0 : i32, i32
  }
  func.func @transform_8(%arg0: i32) -> (i32, i32) {
    %c0_i32 = arith.constant 0 : i32
    %c0_i32_0 = arith.constant 0 : i32
    %c0_i32_1 = arith.constant 0 : i32
    return %c0_i32, %c0_i32_0 : i32, i32
  }
  func.func @transform_9(%arg0: i32) -> (i32, i32) {
    %c0_i32 = arith.constant 0 : i32
    %c0_i32_0 = arith.constant 0 : i32
    return %c0_i32, %arg0 : i32, i32
  }
}

</mosaic_0001>

<bundles_post_ra>
// kernel: tpu_custom_call.1
= control target key start
LH: loop header
LB: loop body
LE: loop exit
PB: predicated region body
PF: predicated region fallthrough
CT: control target
= control target key end

     0   :  { %vm116_vm0 = vcmask 1043456   ;;  %vm91_vm1 = vcmask 97280   ;;  %v713_v4 = vmov 0   ;;  %s921_s0 = inlined_call_operand.vmem [shape: f32[12,2], index: 0, kind: input, shape index: {}]   ;;  %s922_s1 = inlined_call_operand.vmem [shape: f32[64,12], index: 1, kind: input, shape index: {}]   ;;  %s923_s2 = inlined_call_operand.vmem [shape: f32[64,1], index: 2, kind: input, shape index: {}]   ;;  %s924_s3 = inlined_call_operand.vmem [shape: f32[32,32], index: 3, kind: input, shape index: {}]   ;;  %s925_s4 = inlined_call_operand.vmem [shape: f32[32,32], index: 4, kind: input, shape index: {}]   ;;  %s926_s5 = inlined_call_operand.vmem [shape: f32[64,1], index: 5, kind: input, shape index: {}]   ;;  %s927_s6 = inlined_call_operand.vmem [shape: f32[32,1], index: 6, kind: input, shape index: {}]   ;;  %s928_s7 = inlined_call_operand.vmem [shape: f32[32,1], index: 7, kind: input, shape index: {}]   ;;  %s929_s8 = inlined_call_operand.vmem [shape: f32[2,1], index: 8, kind: input, shape index: {}]   ;;  %s930_s9 = inlined_call_operand.hbm [shape: f32[2,2], index: 9, kind: output, shape index: {}]  }
   0x1   :  { %v34_v0 = vld [vmem:[%s921_s0 + $0x8] sm:$0xf]  ;;  %v33_v1 = vld [vmem:[%s921_s0] sm:$0xff]  ;;  %689 = vset.pattern.permute.xlu0 %v713_v4  ;;  %v37_v5 = vld [vmem:[%s922_s1 + $0x10] sm:$0xff]  ;;  %690 = vset.pattern.permute.xlu1 %v713_v4 }
   0x2   :  { %v35_v2 = vld [vmem:[%s922_s1] sm:$0xff]  ;;  %643 = vmatprep.subr.msk.mxu0 %vm116_vm0, %v34_v0  ;;  %v36_v3 = vld [vmem:[%s922_s1 + $0x8] sm:$0xff]  ;;  %v46_v6 = vld [vmem:[%s923_s2 + $0x18] sm:$0xff] }
   0x3   :  { %647 = vmatprep.mubr.msk.f32.mxu0 %vm91_vm1, %v35_v2  ;;  %644 = vmatpush3.msk.msra.mxu0 %vm116_vm0, %v34_v0  ;;  %v44_v7 = vld [vmem:[%s923_s2 + $0x8] sm:$0xff]  ;;  %v45_v8 = vld [vmem:[%s923_s2 + $0x10] sm:$0xff]  ;;  %v38_v9 = vld [vmem:[%s922_s1 + $0x18] sm:$0xff] }
   0x4   :  { %645 = vmatprep.subr.mxu0 %v33_v1  ;;  %68 = vperm.xlu0 %689, %v46_v6   ;;  %v43_v10 = vld [vmem:[%s923_s2] sm:$0xff]  ;;  %v50_v12 = vld [vmem:[%s923_s2 + $0x38] sm:$0xff]  ;;  %v40_v13 = vld [vmem:[%s922_s1 + $0x28] sm:$0xff] }
   0x5   :  { %646 = vmatpush3.msra.mxu0 %v33_v1  ;;  %58 = vperm.xlu1 %690, %v44_v7   ;;  %v39_v11 = vld [vmem:[%s922_s1 + $0x20] sm:$0xff]  ;;  %v49_v14 = vld [vmem:[%s923_s2 + $0x30] sm:$0xff] }
   0x6   :  { %648 = vmatmul.mubr.msk.f32.vlgmr.msra.gmra.mxu0 %vm91_vm1, %v36_v3  ;;  %v41_v15 = vld [vmem:[%s922_s1 + $0x30] sm:$0xff] }
   0x7   :  { %650 = vmatprep.mubr.msk.f32.mxu0 %vm91_vm1, %v37_v5 }
   0x8   :  { %63 = vperm.xlu0 %689, %v45_v8  }
   0x9   :  { %53 = vperm.xlu1 %690, %v43_v10  }
   0xa   :  { %651 = vmatmul.mubr.msk.f32.gmra.mxu0 %vm91_vm1, %v38_v9 }
   0xb   :  { %653 = vmatprep.mubr.msk.f32.mxu0 %vm91_vm1, %v39_v11 }
   0xc   :  { %14 = vsyncpa [#allocation3], 0  ;;  %88 = vperm.xlu0 %689, %v50_v12   ;;  %v48_v16 = vld [vmem:[%s923_s2 + $0x28] sm:$0xff]  ;;  %v42_v17 = vld [vmem:[%s922_s1 + $0x38] sm:$0xff]  ;;  %vm265_vm2 = vcmask 261120   ;;  %vm520_vm3 = vcmask 15360  }
   0xd   :  { %83 = vperm.xlu1 %690, %v49_v14   ;;  %v47_v18 = vld [vmem:[%s923_s2 + $0x20] sm:$0xff]  ;;  %v234_v20 = vld [vmem:[%s926_s5 + $0x8] sm:$0xff]  ;;  %v235_v23 = vld [vmem:[%s926_s5 + $0x10] sm:$0xff]  ;;  %vm575_vm4 = vcmask 1040384   ;;  %vm584_vm5 = vcmask 9216  }
   0xe   :  { %654 = vmatmul.mubr.msk.f32.gmra.mxu0 %vm91_vm1, %v40_v13  ;;  %v233_v19 = vld [vmem:[%s926_s5] sm:$0xff]  ;;  %v238_v22 = vld [vmem:[%s926_s5 + $0x28] sm:$0xff]  ;;  %v239_v24 = vld [vmem:[%s926_s5 + $0x30] sm:$0xff] }
   0xf   :  { %656 = vmatprep.mubr.msk.f32.mxu0 %vm91_vm1, %v41_v15  ;;  %v237_v21 = vld [vmem:[%s926_s5 + $0x20] sm:$0xff]  ;;  %v236_v25 = vld [vmem:[%s926_s5 + $0x18] sm:$0xff]  ;;  %v493_v28 = vld [vmem:[%s927_s6 + $0x8] sm:$0xff] }
  0x10   :  { %78 = vperm.xlu0 %689, %v48_v16   ;;  %v240_v26 = vld [vmem:[%s926_s5 + $0x38] sm:$0xff]  ;;  %v492_v27 = vld [vmem:[%s927_s6] sm:$0xff]  ;;  %v535_v30 = vld [vmem:[%s928_s7 + $0x8] sm:$0xff] }
  0x11   :  { %73 = vperm.xlu1 %690, %v47_v18   ;;  %v534_v29 = vld [vmem:[%s928_s7] sm:$0xff]  ;;  %v494_v31 = vld [vmem:[%s927_s6 + $0x10] sm:$0xff]  ;;  %v495_v33 = vld [vmem:[%s927_s6 + $0x18] sm:$0xff] }
  0x12   :  { %657 = vmatmul.mubr.msk.f32.gmra.mxu0 %vm91_vm1, %v42_v17  ;;  %v536_v32 = vld [vmem:[%s928_s7 + $0x10] sm:$0xff]  ;;  %v537_v34 = vld [vmem:[%s928_s7 + $0x18] sm:$0xff]  ;;  %v577_v35 = vld [vmem:[%s929_s8] sm:$0x3] }
  0x13   :  { %v241_v36 = vld [vmem:[%s924_s3] sm:$0xff]  ;;  %v242_v61 = vld [vmem:[%s924_s3 + $0x8] sm:$0xff]  ;;  %v243_v1 = vld [vmem:[%s924_s3 + $0x10] sm:$0xff] }
  0x14   :  { %247 = vperm.xlu0 %689, %v233_v19   ;;  %667 = vmatprep.mubr.msk.f32.mxu1 %vm265_vm2, %v241_v36  ;;  %v244_v5 = vld [vmem:[%s924_s3 + $0x18] sm:$0xff]  ;;  %v367_v7 = vld [vmem:[%s925_s4] sm:$0xff]  ;;  %v368_v9 = vld [vmem:[%s925_s4 + $0x8] sm:$0xff] }
  0x15   :  { %252 = vperm.xlu1 %690, %v234_v20   ;;  %v369_v10 = vld [vmem:[%s925_s4 + $0x10] sm:$0xff]  ;;  %v370_v11 = vld [vmem:[%s925_s4 + $0x18] sm:$0xff]  ;;  %s714_s4 = smov [#allocation2]  }
  0x16   :  { %s592_s19 = sshll.u32 %s714_s4, 4  ;;  %s593_s19 = int_to_ptr.vmem [resolvable:$true] %s592_s19 }
  0x17   :  { %s691_s20 = scalar_lea.vmem %s593_s19, 32  ;;  %p696_p1 = scmp.lt.s32.totalorder %s593_s19, %s593_s19 }
  0x18   :  { %373 = vperm.xlu0 %689, %v237_v21   ;;  %p692_p0 = scmp.ne.s32.totalorder %s593_s19, %s691_s20  ;;  %p697_p2 = scmp.lt.s32.totalorder %s691_s20, %s691_s20 }
  0x19   :  { %378 = vperm.xlu1 %690, %v238_v22  }
  0x1a   :  { %p698_p3 = por %p697_p2, %p696_p1 }
  0x1c   :  { %257 = vperm.xlu0 %689, %v235_v23   ;;  %p699_p4 = pnand %p698_p3, %p692_p0 }
  0x1d   :  { %383 = vperm.xlu1 %690, %v239_v24  }
  0x20   :  { %262 = vperm.xlu0 %689, %v236_v25  }
  0x21   :  { %388 = vperm.xlu1 %690, %v240_v26  }
  0x24   :  { %498 = vperm.xlu0 %689, %v492_v27  }
  0x25   :  { %503 = vperm.xlu1 %690, %v493_v28  }
  0x28   :  { %540 = vperm.xlu0 %689, %v534_v29  }
  0x29   :  { %545 = vperm.xlu1 %690, %v535_v30  }
  0x2c   :  { %508 = vperm.xlu0 %689, %v494_v31  }
  0x2d   :  { %550 = vperm.xlu1 %690, %v536_v32  }
  0x30   :  { %513 = vperm.xlu0 %689, %v495_v33  }
  0x31   :  { %555 = vperm.xlu1 %690, %v537_v34  }
  0x34   :  { %580 = vperm.xlu0 %689, %v577_v35  }
  0x7f   :  { %v69_v37 = vpop.permute.xlu0 %68 }
  0x80   :  { %v59_v38 = vpop.permute.xlu1 %58 }
  0x83   :  { %v64_v40 = vpop.permute.xlu0 %63 }
  0x84   :  { %v54_v42 = vpop.permute.xlu1 %53 }
  0x87   :  { %v89_v49 = vpop.permute.xlu0 %88 }
  0x88   :  { %v84_v53 = vpop.permute.xlu1 %83 }
  0x8b   :  { %v79_v59 = vpop.permute.xlu0 %78 }
  0x8c   :  { %v74_v2 = vpop.permute.xlu1 %73 }
  0x8f   :  { %v248_v12 = vpop.permute.xlu0 %247 }
  0x90   :  { %v253_v14 = vpop.permute.xlu1 %252 }
  0x93   :  { %v374_v13 = vpop.permute.xlu0 %373 }
  0x94   :  { %v379_v16 = vpop.permute.xlu1 %378 }
  0x97   :  { %v258_v15 = vpop.permute.xlu0 %257 }
  0x98   :  { %v384_v18 = vpop.permute.xlu1 %383 }
  0x9b   :  { %v263_v17 = vpop.permute.xlu0 %262 }
  0x9c   :  { %v389_v20 = vpop.permute.xlu1 %388 }
  0x9f   :  { %v499_v19 = vpop.permute.xlu0 %498 }
  0xa0   :  { %v504_v22 = vpop.permute.xlu1 %503 }
  0xa3   :  { %v541_v21 = vpop.permute.xlu0 %540 }
  0xa4   :  { %v546_v32 = vpop.permute.xlu1 %545 }
  0xa7   :  { %v509_v26 = vpop.permute.xlu0 %508 }
  0xc6   :  { %v649_v39 = vpop.f32.mrf.mxu0 }
  0xc7   :  { %v192_v46 = vadd.f32 %v649_v39, %v59_v38  ;;  %v514_v39 = vpop.permute.xlu0 %513 }
  0xc8   :  { %v186_v41 = vpop.f32.mrf.mxu0 }
  0xc9   :  { %v187_v51 = vadd.f32 %v186_v41, %v54_v42  ;;  %v226_v55 = vmax.f32 %v192_v46, 0.0 }
  0xca   :  { %v652_v43 = vpop.f32.mrf.mxu0 }
  0xcb   :  { %v202_v44 = vadd.f32 %v652_v43, %v69_v37  ;;  %v225_v57 = vmax.f32 %v187_v51, 0.0 }
  0xcc   :  { %v196_v45 = vpop.f32.mrf.mxu0 }
  0xcd   :  { %v228_v47 = vmax.f32 %v202_v44, 0.0  ;;  %v197_v48 = vadd.f32 %v196_v45, %v64_v40 }
  0xce   :  { %v655_v50 = vpop.f32.mrf.mxu0 }
  0xcf   :  { %v227_v52 = vmax.f32 %v197_v48, 0.0  ;;  %659 = vmatprep.subr.mxu1 %v228_v47  ;;  %v212_v62 = vadd.f32 %v655_v50, %v79_v59 }
  0xd0   :  { %v206_v54 = vpop.f32.mrf.mxu0  ;;  %660 = vmatpush3.msra.mxu1 %v228_v47 }
  0xd1   :  { %661 = vmatprep.subr.mxu1 %v227_v52  ;;  %v207_v3 = vadd.f32 %v206_v54, %v74_v2  ;;  %v230_v6 = vmax.f32 %v212_v62, 0.0 }
  0xd2   :  { %v658_v56 = vpop.f32.mrf.mxu0  ;;  %662 = vmatpush3.msra.mxu1 %v227_v52 }
  0xd3   :  { %v222_v58 = vadd.f32 %v658_v56, %v89_v49  ;;  %663 = vmatprep.subr.mxu1 %v226_v55  ;;  %v229_v8 = vmax.f32 %v207_v3, 0.0  ;;  %v551_v49 = vpop.permute.xlu1 %550 }
  0xd4   :  { %v216_v60 = vpop.f32.mrf.mxu0  ;;  %664 = vmatpush3.msra.mxu1 %v226_v55 }
  0xd5   :  { %v232_v63 = vmax.f32 %v222_v58, 0.0  ;;  %v217_v0 = vadd.f32 %v216_v60, %v84_v53  ;;  %665 = vmatprep.subr.mxu1 %v225_v57 }
  0xd6   :  { %666 = vmatpush3.msra.mxu1 %v225_v57 }
  0xd7   :  { %v231_v4 = vmax.f32 %v217_v0, 0.0  ;;  %668 = vmatmul.mubr.msk.f32.vlgmr.msra.gmra.mxu1 %vm265_vm2, %v242_v61  ;;  %673 = vmatprep.subr.mxu1 %v232_v63 }
  0xd8   :  { %674 = vmatpush3.msra.mxu1 %v232_v63  ;;  %670 = vmatprep.mubr.msk.f32.mxu1 %vm265_vm2, %v243_v1  ;;  %v556_v1 = vpop.permute.xlu1 %555 }
  0xd9   :  { %675 = vmatprep.subr.mxu1 %v231_v4 }
  0xda   :  { %676 = vmatpush3.msra.mxu1 %v231_v4 }
  0xdb   :  { %671 = vmatmul.mubr.msk.f32.gmra.mxu1 %vm265_vm2, %v244_v5  ;;  %677 = vmatprep.subr.mxu1 %v230_v6 }
  0xdc   :  { %678 = vmatpush3.msra.mxu1 %v230_v6  ;;  %681 = vmatprep.mubr.msk.f32.mxu1 %vm265_vm2, %v367_v7 }
  0xdd   :  { %679 = vmatprep.subr.mxu1 %v229_v8 }
  0xde   :  { %680 = vmatpush3.msra.mxu1 %v229_v8 }
  0xdf   :  { %682 = vmatmul.mubr.msk.f32.vlgmr.msra.gmra.mxu1 %vm265_vm2, %v368_v9 }
  0xe0   :  { %684 = vmatprep.mubr.msk.f32.mxu1 %vm265_vm2, %v369_v10 }
  0xe3   :  { %685 = vmatmul.mubr.msk.f32.gmra.mxu1 %vm265_vm2, %v370_v11 }
 0x197   :  { %v669_v23 = vpop.f32.mrf.mxu1 }
 0x198   :  { %v350_v24 = vadd.f32 %v669_v23, %v253_v14 }
 0x199   :  { %v344_v25 = vpop.f32.mrf.mxu1 }
 0x19a   :  { %v364_v27 = vmax.f32 %v350_v24, 0.0  ;;  %v345_v28 = vadd.f32 %v344_v25, %v248_v12 }
 0x19b   :  { %v672_v29 = vpop.f32.mrf.mxu1 }
 0x19c   :  { %v363_v30 = vmax.f32 %v345_v28, 0.0  ;;  %v360_v31 = vadd.f32 %v672_v29, %v263_v17  ;;  %v517_v34 = vmul.f32 %v504_v22, %v364_v27  ;;  %v581_v22 = vpop.permute.xlu0 %580 }
 0x19d   :  { %v354_v33 = vpop.f32.mrf.mxu1 }
 0x19e   :  { %v516_v35 = vmul.f32 %v499_v19, %v363_v30  ;;  %v366_v36 = vmax.f32 %v360_v31, 0.0  ;;  %v355_v37 = vadd.f32 %v354_v33, %v258_v15  ;;  %v522_v45 = vsel %vm520_vm3, %v517_v34, 0.0 }
 0x19f   :  { %v683_v38 = vpop.f32.mrf.mxu1 }
 0x1a0   :  { %v521_v40 = vsel %vm520_vm3, %v516_v35, 0.0  ;;  %v365_v41 = vmax.f32 %v355_v37, 0.0  ;;  %v475_v42 = vadd.f32 %v683_v38, %v379_v16  ;;  %v519_v43 = vmul.f32 %v514_v39, %v366_v36 }
 0x1a1   :  { %v469_v44 = vpop.f32.mrf.mxu1  ;;  %v523_v50 = vadd.f32 %v522_v45, %v521_v40 }
 0x1a2   :  { %v518_v46 = vmul.f32 %v509_v26, %v365_v41  ;;  %v489_v47 = vmax.f32 %v475_v42, 0.0  ;;  %v470_v48 = vadd.f32 %v469_v44, %v374_v13  ;;  %v526_v55 = vsel %vm520_vm3, %v519_v43, 0.0 }
 0x1a3   :  { %v686_v51 = vpop.f32.mrf.mxu1 }
 0x1a4   :  { %v524_v52 = vsel %vm520_vm3, %v518_v46, 0.0  ;;  %v488_v53 = vmax.f32 %v470_v48, 0.0  ;;  %v485_v54 = vadd.f32 %v686_v51, %v389_v20  ;;  %v559_v58 = vmul.f32 %v546_v32, %v489_v47 }
 0x1a5   :  { %v525_v56 = vadd.f32 %v524_v52, %v523_v50  ;;  %v479_v57 = vpop.f32.mrf.mxu1 }
 0x1a6   :  { %v558_v59 = vmul.f32 %v541_v21, %v488_v53  ;;  %v491_v60 = vmax.f32 %v485_v54, 0.0  ;;  %v480_v61 = vadd.f32 %v479_v57, %v384_v18  ;;  %v563_v3 = vsel %vm520_vm3, %v559_v58, 0.0 }
 0x1a7   :  { %v527_v62 = vadd.f32 %v526_v55, %v525_v56 }
 0x1a8   :  { %v562_v63 = vsel %vm520_vm3, %v558_v59, 0.0  ;;  %v490_v0 = vmax.f32 %v480_v61, 0.0  ;;  %v561_v4 = vmul.f32 %v556_v1, %v491_v60 }
 0x1a9   :  { %v528_v2 = vrot.slane %v527_v62, 4  ;;  %v564_v7 = vadd.f32 %v563_v3, %v562_v63 }
 0x1aa   :  { %v560_v5 = vmul.f32 %v551_v49, %v490_v0  ;;  %v567_v10 = vsel %vm520_vm3, %v561_v4, 0.0 }
 0x1ab   :  { %v529_v6 = vadd.f32 %v528_v2, %v527_v62 }
 0x1ac   :  { %v565_v8 = vsel %vm520_vm3, %v560_v5, 0.0 }
 0x1ad   :  { %v566_v9 = vadd.f32 %v565_v8, %v564_v7  ;;  %v530_v11 = vrot.slane %v529_v6, 2 }
 0x1af   :  { %v568_v12 = vadd.f32 %v567_v10, %v566_v9  ;;  %v531_v15 = vadd.f32 %v530_v11, %v529_v6 }
 0x1b1   :  { %v569_v13 = vrot.slane %v568_v12, 4  ;;  %v532_v17 = vrot.slane %v531_v15, 1 }
 0x1b3   :  { %v570_v14 = vadd.f32 %v569_v13, %v568_v12  ;;  %v533_v20 = vadd.f32 %v532_v17, %v531_v15 }
 0x1b5   :  { %v571_v16 = vrot.slane %v570_v14, 2 }
 0x1b7   :  { %v572_v18 = vadd.f32 %v571_v16, %v570_v14 }
 0x1b9   :  { %v573_v19 = vrot.slane %v572_v18, 1 }
 0x1bb   :  { %v574_v21 = vadd.f32 %v573_v19, %v572_v18 }
 0x1bd   :  { %v576_v23 = vsel %vm575_vm4, %v533_v20, %v574_v21 }
 0x1be   :  { %v583_v24 = vadd.f32 %v581_v22, %v576_v23 }
 0x1c0   :  { %585 = vst.msk [vmem:[#allocation2] sm:$0x3] %vm584_vm5, %v583_v24 }
 0x1c1   :  { %702 = shalt.err (!%p699_p4)
}
 0x1c2   :  { %595 = dma.vmem_to_hbm [thread:$0]  %s593_s19, 32, %s930_s9, [#allocation3]  }
 0x1c3   :  { %711 = dma.done.wait [#allocation3], 32  }
 0x1c4   :  { %712 = vsyncadd [#allocation3], 4294967264 }
 0x1c5   :  { %599 = vsyncpa [#allocation3], 1 }

</bundles_post_ra>
